<compile_context>
chip_gen: v7x
topology: tpu7x:2x2x1
jax: 0.10.0
libtpu: 0.0.40
codegen_flags: <defaults>
</compile_context>

<pallas_src>
import math

import jax
import jax.numpy as jnp
from jax.experimental import pallas as pl
from jax.experimental.pallas import tpu as pltpu

EPS = 1e-5      # nn.BatchNorm1d default
LANE = 128      # TPU lane width
SUBLANE = 8     # TPU sublane count (f32)


def _round_up(x, m):
    return ((x + m - 1) // m) * m


def _full_spec(shape):
    # Whole array as a single VMEM block (no grid).
    return pl.BlockSpec(shape, lambda: (0,) * len(shape))


# ---------------- fused kernel ----------------

def _make_fused_mlp_kernel(n_hidden, real_b, b_pad):
    """Builds the fused kernel body; the layer loop is unrolled at trace time."""

    def kernel(*refs):
        # refs = [x, (w_i, gamma_i, beta_i) * n_hidden, w_out, b_out, o_ref]
        x_ref = refs[0]
        w_out_ref = refs[1 + 3 * n_hidden]
        b_out_ref = refs[2 + 3 * n_hidden]
        o_ref = refs[3 + 3 * n_hidden]

        h = x_ref[...]                                    # f32 [B_pad, K_pad]
        inv_b = jnp.float32(1.0 / real_b)
        mask_rows = b_pad > real_b
        if mask_rows:
            row_mask = jax.lax.broadcasted_iota(jnp.int32, (b_pad, 1), 0) < real_b

        for li in range(n_hidden):
            w = refs[1 + 3 * li][...]                     # bf16 [K_pad, H_pad]
            gamma = refs[2 + 3 * li][...]                 # f32  [1, H_pad]
            beta = refs[3 + 3 * li][...]                  # f32  [1, H_pad]

            # Linear (no bias): bf16 MXU inputs, f32 accumulate.
            z = jnp.dot(h.astype(jnp.bfloat16), w,
                        preferred_element_type=jnp.float32)   # f32 [B_pad, H_pad]

            # One-pass BatchNorm batch statistics. Padded batch rows of z are
            # exactly zero, so dividing by the *real* batch size gives exact
            # (biased-variance) batch stats.
            s = jnp.sum(z, axis=0, keepdims=True)
            ss = jnp.sum(z * z, axis=0, keepdims=True)
            mean = s * inv_b
            var = jnp.maximum(ss * inv_b - mean * mean, 0.0)
            inv_std = jax.lax.rsqrt(var + EPS)                # EUP slot
            scale = gamma * inv_std                           # [1, H_pad]
            shift = beta - mean * scale                       # [1, H_pad]

            # Fused normalize + affine + ReLU: one pass over [B_pad, H_pad].
            h = jnp.maximum(z * scale + shift, 0.0)
            if mask_rows:
                # Re-zero padded batch rows so the next layer's stats stay exact.
                h = jnp.where(row_mask, h, 0.0)

        # Final Linear (with bias).
        z = jnp.dot(h.astype(jnp.bfloat16), w_out_ref[...],
                    preferred_element_type=jnp.float32)
        o_ref[...] = (z + b_out_ref[...]).astype(o_ref.dtype)

    return kernel


# ---------------- params / wrappers ----------------

def init_params(key, input_dim, output_dim, n_hidden_layers, hidden_units):
    """PyTorch-default init, stored pre-transposed ([in, out]) and zero-padded
    to 128-lane multiples; linear weights are kept in bf16 (MXU input dtype)."""
    d_pad = _round_up(input_dim, LANE)
    h_pad = _round_up(hidden_units, LANE) if n_hidden_layers > 0 else d_pad
    o_pad = _round_up(output_dim, LANE)

    hidden = []
    in_dim, in_pad = input_dim, d_pad
    for _ in range(n_hidden_layers):
        key, k = jax.random.split(key)
        bound = 1.0 / math.sqrt(in_dim)
        w = jax.random.uniform(k, (in_dim, hidden_units), jnp.float32, -bound, bound)
        w_p = jnp.zeros((in_pad, h_pad), jnp.float32).at[:in_dim, :hidden_units].set(w)
        gamma = jnp.zeros((1, h_pad), jnp.float32).at[:, :hidden_units].set(1.0)
        beta = jnp.zeros((1, h_pad), jnp.float32)
        hidden.append((w_p.astype(jnp.bfloat16), gamma, beta))
        in_dim, in_pad = hidden_units, h_pad

    key, k1, k2 = jax.random.split(key, 3)
    bound = 1.0 / math.sqrt(in_dim)
    w_out = jax.random.uniform(k1, (in_dim, output_dim), jnp.float32, -bound, bound)
    b_out = jax.random.uniform(k2, (1, output_dim), jnp.float32, -bound, bound)
    w_out_p = jnp.zeros((in_pad, o_pad), jnp.float32).at[:in_dim, :output_dim].set(w_out)
    b_out_p = jnp.zeros((1, o_pad), jnp.float32).at[:, :output_dim].set(b_out)

    return {
        "hidden": hidden,
        "w_out": w_out_p.astype(jnp.bfloat16),
        "b_out": b_out_p,
        "dims": (input_dim, output_dim, n_hidden_layers, hidden_units),
    }


def mlp_forward(x, params):
    input_dim, output_dim, n_hidden, _ = params["dims"]
    B = x.shape[0]
    b_pad = _round_up(B, SUBLANE)
    d_pad = _round_up(input_dim, LANE)
    o_pad = params["b_out"].shape[1]

    # Zero-pad input: padded rows/cols contribute nothing downstream.
    x_pad = jnp.zeros((b_pad, d_pad), jnp.float32).at[:B, :input_dim].set(
        x.astype(jnp.float32))

    inputs = [x_pad]
    in_specs = [_full_spec(x_pad.shape)]
    for (w, gamma, beta) in params["hidden"]:
        inputs += [w, gamma, beta]
        in_specs += [_full_spec(w.shape), _full_spec(gamma.shape), _full_spec(beta.shape)]
    inputs += [params["w_out"], params["b_out"]]
    in_specs += [_full_spec(params["w_out"].shape), _full_spec(params["b_out"].shape)]

    out_pad = pl.pallas_call(
        _make_fused_mlp_kernel(n_hidden, B, b_pad),
        out_shape=jax.ShapeDtypeStruct((b_pad, o_pad), jnp.float32),
        in_specs=in_specs,
        out_specs=_full_spec((b_pad, o_pad)),
        compiler_params=pltpu.CompilerParams(
            # Whole-net-in-VMEM regime; 32 MiB is plenty here and leaves
            # headroom under v7x's 64 MiB physical VMEM.
            vmem_limit_bytes=32 * 1024 * 1024,
        ),
    )(*inputs)
    return out_pad[:B, :output_dim]


# ---------------- pure-JAX reference (for correctness check) ----------------

def mlp_reference(x, params):
    input_dim, output_dim, _, hidden_units = params["dims"]
    h = x.astype(jnp.float32)
    in_dim = input_dim
    for (w, gamma, beta) in params["hidden"]:
        w32 = w.astype(jnp.float32)[:in_dim, :hidden_units]
        z = h @ w32
        mean = jnp.mean(z, axis=0, keepdims=True)
        var = jnp.mean((z - mean) ** 2, axis=0, keepdims=True)
        zh = (z - mean) * jax.lax.rsqrt(var + EPS)
        h = jnp.maximum(zh * gamma[:, :hidden_units] + beta[:, :hidden_units], 0.0)
        in_dim = hidden_units
    w32 = params["w_out"].astype(jnp.float32)[:in_dim, :output_dim]
    return h @ w32 + params["b_out"][:, :output_dim]


if __name__ == "__main__":
    # Small shapes consistent with MLP(input_dim, output_dim, n_hidden_layers, hidden_units)
    batch = 8
    input_dim = 16
    output_dim = 8
    n_hidden_layers = 2
    hidden_units = 32

    key = jax.random.PRNGKey(0)
    key, kx, kp = jax.random.split(key, 3)
    x = jax.random.normal(kx, (batch, input_dim), dtype=jnp.float32)
    params = init_params(kp, input_dim, output_dim, n_hidden_layers, hidden_units)

    out = jax.block_until_ready(mlp_forward(x, params))
    assert out.shape == (batch, output_dim)
    assert bool(jnp.all(jnp.isfinite(out)))

    ref = mlp_reference(x, params)
    # bf16 MXU inputs -> loose tolerance vs. the f32 reference.
    assert bool(jnp.allclose(out, ref, rtol=5e-2, atol=5e-2)), \
        float(jnp.max(jnp.abs(out - ref)))

    print("KERNEL_OK")
</pallas_src>

<mosaic_0001>
module attributes {stable_mosaic.version = 11 : i64} {
  func.func @kernel(%arg0: memref<8x128xf32, #tpu.memory_space<vmem>>, %arg1: memref<128x128xbf16, #tpu.memory_space<vmem>>, %arg2: memref<1x128xf32, #tpu.memory_space<vmem>>, %arg3: memref<1x128xf32, #tpu.memory_space<vmem>>, %arg4: memref<128x128xbf16, #tpu.memory_space<vmem>>, %arg5: memref<1x128xf32, #tpu.memory_space<vmem>>, %arg6: memref<1x128xf32, #tpu.memory_space<vmem>>, %arg7: memref<128x128xbf16, #tpu.memory_space<vmem>>, %arg8: memref<1x128xf32, #tpu.memory_space<vmem>>, %arg9: memref<8x128xf32, #tpu.memory_space<vmem>>) attributes {dimension_semantics = [], scalar_prefetch = 0 : i64, scratch_operands = 0 : i64, tpu.core_type = #tpu.core_type<tc>} {
    %c0 = arith.constant 0 : index
    %c0_0 = arith.constant 0 : index
    %0 = vector.load %arg0[%c0, %c0_0] : memref<8x128xf32, #tpu.memory_space<vmem>>, vector<8x128xf32>
    %c0_1 = arith.constant 0 : index
    %c0_2 = arith.constant 0 : index
    %1 = vector.load %arg1[%c0_1, %c0_2] : memref<128x128xbf16, #tpu.memory_space<vmem>>, vector<128x128xbf16>
    %c0_3 = arith.constant 0 : index
    %c0_4 = arith.constant 0 : index
    %2 = vector.load %arg2[%c0_3, %c0_4] : memref<1x128xf32, #tpu.memory_space<vmem>>, vector<1x128xf32>
    %c0_5 = arith.constant 0 : index
    %c0_6 = arith.constant 0 : index
    %3 = vector.load %arg3[%c0_5, %c0_6] : memref<1x128xf32, #tpu.memory_space<vmem>>, vector<1x128xf32>
    %4 = arith.truncf %0 : vector<8x128xf32> to vector<8x128xbf16>
    %cst = arith.constant dense<0.000000e+00> : vector<8x128xf32>
    %5 = tpu.matmul %4, %1, %cst {dimension_numbers = #tpu.dot_dimension_numbers<[1], [0], [0], [1], [0, 0, 1, 1], [], []>} : vector<8x128xbf16>, vector<128x128xbf16>, vector<8x128xf32> -> vector<8x128xf32>
    %cst_7 = arith.constant dense<0.000000e+00> : vector<128xf32>
    %6 = vector.multi_reduction <add>, %5, %cst_7 [0] : vector<8x128xf32> to vector<128xf32>
    %7 = vector.shape_cast %6 : vector<128xf32> to vector<1x128xf32>
    %8 = arith.mulf %5, %5 : vector<8x128xf32>
    %cst_8 = arith.constant dense<0.000000e+00> : vector<128xf32>
    %9 = vector.multi_reduction <add>, %8, %cst_8 [0] : vector<8x128xf32> to vector<128xf32>
    %10 = vector.shape_cast %9 : vector<128xf32> to vector<1x128xf32>
    %cst_9 = arith.constant 1.250000e-01 : f32
    %11 = vector.broadcast %cst_9 : f32 to vector<1x128xf32>
    %12 = arith.mulf %7, %11 : vector<1x128xf32>
    %cst_10 = arith.constant 1.250000e-01 : f32
    %13 = vector.broadcast %cst_10 : f32 to vector<1x128xf32>
    %14 = arith.mulf %10, %13 : vector<1x128xf32>
    %15 = arith.mulf %12, %12 : vector<1x128xf32>
    %16 = arith.subf %14, %15 : vector<1x128xf32>
    %cst_11 = arith.constant 0.000000e+00 : f32
    %17 = vector.broadcast %cst_11 : f32 to vector<1x128xf32>
    %18 = arith.maximumf %16, %17 : vector<1x128xf32>
    %cst_12 = arith.constant 9.99999974E-6 : f32
    %19 = vector.broadcast %cst_12 : f32 to vector<1x128xf32>
    %20 = arith.addf %18, %19 : vector<1x128xf32>
    %21 = math.rsqrt %20 : vector<1x128xf32>
    %22 = arith.mulf %2, %21 : vector<1x128xf32>
    %23 = arith.mulf %12, %22 : vector<1x128xf32>
    %24 = arith.subf %3, %23 : vector<1x128xf32>
    %25 = vector.broadcast %22 : vector<1x128xf32> to vector<8x128xf32>
    %26 = arith.mulf %5, %25 : vector<8x128xf32>
    %27 = vector.broadcast %24 : vector<1x128xf32> to vector<8x128xf32>
    %28 = arith.addf %26, %27 : vector<8x128xf32>
    %cst_13 = arith.constant 0.000000e+00 : f32
    %29 = vector.broadcast %cst_13 : f32 to vector<8x128xf32>
    %30 = arith.maximumf %28, %29 : vector<8x128xf32>
    %c0_14 = arith.constant 0 : index
    %c0_15 = arith.constant 0 : index
    %31 = vector.load %arg4[%c0_14, %c0_15] : memref<128x128xbf16, #tpu.memory_space<vmem>>, vector<128x128xbf16>
    %c0_16 = arith.constant 0 : index
    %c0_17 = arith.constant 0 : index
    %32 = vector.load %arg5[%c0_16, %c0_17] : memref<1x128xf32, #tpu.memory_space<vmem>>, vector<1x128xf32>
    %c0_18 = arith.constant 0 : index
    %c0_19 = arith.constant 0 : index
    %33 = vector.load %arg6[%c0_18, %c0_19] : memref<1x128xf32, #tpu.memory_space<vmem>>, vector<1x128xf32>
    %34 = arith.truncf %30 : vector<8x128xf32> to vector<8x128xbf16>
    %cst_20 = arith.constant dense<0.000000e+00> : vector<8x128xf32>
    %35 = tpu.matmul %34, %31, %cst_20 {dimension_numbers = #tpu.dot_dimension_numbers<[1], [0], [0], [1], [0, 0, 1, 1], [], []>} : vector<8x128xbf16>, vector<128x128xbf16>, vector<8x128xf32> -> vector<8x128xf32>
    %cst_21 = arith.constant dense<0.000000e+00> : vector<128xf32>
    %36 = vector.multi_reduction <add>, %35, %cst_21 [0] : vector<8x128xf32> to vector<128xf32>
    %37 = vector.shape_cast %36 : vector<128xf32> to vector<1x128xf32>
    %38 = arith.mulf %35, %35 : vector<8x128xf32>
    %cst_22 = arith.constant dense<0.000000e+00> : vector<128xf32>
    %39 = vector.multi_reduction <add>, %38, %cst_22 [0] : vector<8x128xf32> to vector<128xf32>
    %40 = vector.shape_cast %39 : vector<128xf32> to vector<1x128xf32>
    %cst_23 = arith.constant 1.250000e-01 : f32
    %41 = vector.broadcast %cst_23 : f32 to vector<1x128xf32>
    %42 = arith.mulf %37, %41 : vector<1x128xf32>
    %cst_24 = arith.constant 1.250000e-01 : f32
    %43 = vector.broadcast %cst_24 : f32 to vector<1x128xf32>
    %44 = arith.mulf %40, %43 : vector<1x128xf32>
    %45 = arith.mulf %42, %42 : vector<1x128xf32>
    %46 = arith.subf %44, %45 : vector<1x128xf32>
    %cst_25 = arith.constant 0.000000e+00 : f32
    %47 = vector.broadcast %cst_25 : f32 to vector<1x128xf32>
    %48 = arith.maximumf %46, %47 : vector<1x128xf32>
    %cst_26 = arith.constant 9.99999974E-6 : f32
    %49 = vector.broadcast %cst_26 : f32 to vector<1x128xf32>
    %50 = arith.addf %48, %49 : vector<1x128xf32>
    %51 = math.rsqrt %50 : vector<1x128xf32>
    %52 = arith.mulf %32, %51 : vector<1x128xf32>
    %53 = arith.mulf %42, %52 : vector<1x128xf32>
    %54 = arith.subf %33, %53 : vector<1x128xf32>
    %55 = vector.broadcast %52 : vector<1x128xf32> to vector<8x128xf32>
    %56 = arith.mulf %35, %55 : vector<8x128xf32>
    %57 = vector.broadcast %54 : vector<1x128xf32> to vector<8x128xf32>
    %58 = arith.addf %56, %57 : vector<8x128xf32>
    %cst_27 = arith.constant 0.000000e+00 : f32
    %59 = vector.broadcast %cst_27 : f32 to vector<8x128xf32>
    %60 = arith.maximumf %58, %59 : vector<8x128xf32>
    %61 = arith.truncf %60 : vector<8x128xf32> to vector<8x128xbf16>
    %c0_28 = arith.constant 0 : index
    %c0_29 = arith.constant 0 : index
    %62 = vector.load %arg7[%c0_28, %c0_29] : memref<128x128xbf16, #tpu.memory_space<vmem>>, vector<128x128xbf16>
    %cst_30 = arith.constant dense<0.000000e+00> : vector<8x128xf32>
    %63 = tpu.matmul %61, %62, %cst_30 {dimension_numbers = #tpu.dot_dimension_numbers<[1], [0], [0], [1], [0, 0, 1, 1], [], []>} : vector<8x128xbf16>, vector<128x128xbf16>, vector<8x128xf32> -> vector<8x128xf32>
    %c0_31 = arith.constant 0 : index
    %c0_32 = arith.constant 0 : index
    %64 = vector.load %arg8[%c0_31, %c0_32] : memref<1x128xf32, #tpu.memory_space<vmem>>, vector<1x128xf32>
    %65 = vector.broadcast %64 : vector<1x128xf32> to vector<8x128xf32>
    %66 = arith.addf %63, %65 : vector<8x128xf32>
    %c0_33 = arith.constant 0 : index
    %c0_34 = arith.constant 0 : index
    %67 = vector.load %arg9[%c0_33, %c0_34] : memref<8x128xf32, #tpu.memory_space<vmem>>, vector<8x128xf32>
    tpu.vector_store %arg9[%c0_33, %c0_34], %66 {strides = array<i32>} : memref<8x128xf32, #tpu.memory_space<vmem>>, vector<8x128xf32>,
    return
  }
}

</mosaic_0001>

<bundles_post_ra>
// kernel: tpu_custom_call.1
= control target key start
LH: loop header
LB: loop body
LE: loop exit
PB: predicated region body
PF: predicated region fallthrough
CT: control target
= control target key end

     0   :  { %14 = vsyncpa [#allocation3], 0  ;;  %s954_s0 = inlined_call_operand.hbm [shape: f32[8,128], index: 0, kind: input, shape index: {}]   ;;  %s955_s1 = inlined_call_operand.hbm [shape: bf16[128,128], index: 1, kind: input, shape index: {}]   ;;  %s956_s2 = inlined_call_operand.vmem [shape: f32[1,128], index: 2, kind: input, shape index: {}]   ;;  %s957_s3 = inlined_call_operand.vmem [shape: f32[1,128], index: 3, kind: input, shape index: {}]   ;;  %s958_s4 = inlined_call_operand.hbm [shape: bf16[128,128], index: 4, kind: input, shape index: {}]   ;;  %s959_s5 = inlined_call_operand.vmem [shape: f32[1,128], index: 5, kind: input, shape index: {}]   ;;  %s960_s6 = inlined_call_operand.vmem [shape: f32[1,128], index: 6, kind: input, shape index: {}]   ;;  %s961_s7 = inlined_call_operand.hbm [shape: bf16[128,128], index: 7, kind: input, shape index: {}]   ;;  %s962_s8 = inlined_call_operand.vmem [shape: f32[1,128], index: 8, kind: input, shape index: {}]   ;;  %s963_s9 = inlined_call_operand.hbm [shape: f32[8,128], index: 9, kind: output, shape index: {}]  }
   0x1   :  { %15 = vsyncpa [#allocation6], 0 }
   0x2   :  { %16 = vsyncpa [#allocation9], 0 }
   0x3   :  { %17 = vsyncpa [#allocation4], 0  ;;  %s775_s30 = smov [#allocation5]   ;;  %s657_s13 = scalar_lea.hbm %s955_s1, 1024 }
   0x4   :  { %s33_s10 = sshll.u32 %s775_s30, 4  ;;  %p658_p0 = scmp.ne.s32.totalorder %s955_s1, %s657_s13  ;;  %s34_s10 = int_to_ptr.vmem [resolvable:$true] %s33_s10 }
   0x5   :  { %p661_p1 = scmp.lt.u32.totalorder %s657_s13, %s955_s1 }
   0x7   :  { %p663_p2 = pnand %p661_p1, %p658_p0 }
   0x9   :  { %666 = shalt.err (!%p663_p2)
}
   0xa   :  { %s667_s18 = scalar_lea.vmem %s34_s10, 1024  ;;  %p672_p4 = scmp.lt.s32.totalorder %s34_s10, %s34_s10 }
   0xb   :  { %p668_p3 = scmp.ne.s32.totalorder %s34_s10, %s667_s18  ;;  %p673_p5 = scmp.lt.s32.totalorder %s667_s18, %s667_s18 }
   0xd   :  { %p674_p6 = por %p673_p5, %p672_p4 }
   0xf   :  { %p675_p7 = pnand %p674_p6, %p668_p3 }
  0x11   :  { %678 = shalt.err (!%p675_p7)
}
  0x12   :  { %s776_s19 = smov 64   ;;  %s777_s20 = smov 4  }
  0x13   :  { %39 = dma.hbm_to_vmem [thread:$0]  %s955_s1, 1024, %s34_s10, [#allocation6], %s776_s19, %s776_s19, %s777_s20  }
  0x14   :  { %s778_s23 = smov [#allocation2]   ;;  %s779_s25 = smov [#allocation7]  }
  0x15   :  { %s24_s24 = sshll.u32 %s778_s23, 4  ;;  %s49_s26 = sshll.u32 %s779_s25, 4  ;;  %s25_s24 = int_to_ptr.vmem [resolvable:$true] %s24_s24  ;;  %s50_s26 = int_to_ptr.vmem [resolvable:$true] %s49_s26 }
  0x16   :  { %s679_s29 = scalar_lea.hbm %s954_s0, 128 }
  0x17   :  { %p680_p8 = scmp.ne.s32.totalorder %s954_s0, %s679_s29  ;;  %p683_p9 = scmp.lt.u32.totalorder %s679_s29, %s954_s0 }
  0x19   :  { %p685_p10 = pnand %p683_p9, %p680_p8 }
  0x1b   :  { %688 = shalt.err (!%p685_p10)
}
  0x1c   :  { %s689_s1 = scalar_lea.vmem %s25_s24, 128  ;;  %p694_p12 = scmp.lt.s32.totalorder %s25_s24, %s25_s24 }
  0x1d   :  { %p690_p11 = scmp.ne.s32.totalorder %s25_s24, %s689_s1  ;;  %p695_p13 = scmp.lt.s32.totalorder %s689_s1, %s689_s1 }
  0x1f   :  { %p696_p0 = por %p695_p13, %p694_p12 }
  0x21   :  { %p697_p1 = pnand %p696_p0, %p690_p11 }
  0x23   :  { %700 = shalt.err (!%p697_p1)
}
  0x24   :  { %27 = dma.hbm_to_vmem [thread:$0]  %s954_s0, 128, %s25_s24, [#allocation3]  }
  0x25   :  { %s701_s17 = scalar_lea.hbm %s958_s4, 1024 }
  0x26   :  { %p702_p2 = scmp.ne.s32.totalorder %s958_s4, %s701_s17  ;;  %p705_p3 = scmp.lt.u32.totalorder %s701_s17, %s958_s4 }
  0x28   :  { %p707_p4 = pnand %p705_p3, %p702_p2 }
  0x2a   :  { %710 = shalt.err (!%p707_p4)
}
  0x2b   :  { %s711_s25 = scalar_lea.vmem %s50_s26, 1024  ;;  %p716_p6 = scmp.lt.s32.totalorder %s50_s26, %s50_s26 }
  0x2c   :  { %p712_p5 = scmp.ne.s32.totalorder %s50_s26, %s711_s25  ;;  %p717_p7 = scmp.lt.s32.totalorder %s711_s25, %s711_s25 }
  0x2e   :  { %p718_p8 = por %p717_p7, %p716_p6 }
  0x30   :  { %p719_p9 = pnand %p718_p8, %p712_p5 }
  0x32   :  { %722 = shalt.err (!%p719_p9)
}
  0x33   :  { %55 = dma.hbm_to_vmem [thread:$0]  %s958_s4, 1024, %s50_s26, [#allocation6], %s776_s19, %s776_s19, %s777_s20  }
  0x34   :  { %s780_s27 = smov [#allocation8]   ;;  %s723_s11 = scalar_lea.hbm %s961_s7, 1024 }
  0x35   :  { %s65_s28 = sshll.u32 %s780_s27, 4  ;;  %p724_p10 = scmp.ne.s32.totalorder %s961_s7, %s723_s11  ;;  %s66_s28 = int_to_ptr.vmem [resolvable:$true] %s65_s28 }
  0x36   :  { %p727_p11 = scmp.lt.u32.totalorder %s723_s11, %s961_s7 }
  0x38   :  { %p729_p12 = pnand %p727_p11, %p724_p10 }
  0x3a   :  { %732 = shalt.err (!%p729_p12)
}
  0x3b   :  { %s733_s14 = scalar_lea.vmem %s66_s28, 1024  ;;  %p738_p0 = scmp.lt.s32.totalorder %s66_s28, %s66_s28 }
  0x3c   :  { %p734_p13 = scmp.ne.s32.totalorder %s66_s28, %s733_s14  ;;  %p739_p1 = scmp.lt.s32.totalorder %s733_s14, %s733_s14 }
  0x3e   :  { %p740_p2 = por %p739_p1, %p738_p0 }
  0x40   :  { %p741_p3 = pnand %p740_p2, %p734_p13 }
  0x42   :  { %744 = shalt.err (!%p741_p3)
}
  0x43   :  { %71 = dma.hbm_to_vmem [thread:$0]  %s961_s7, 1024, %s66_s28, [#allocation9], %s776_s19, %s776_s19, %s777_s20  }
  0x44   :  { %767 = dma.done.wait [#allocation3], 128  }
  0x45   :  { %768 = vsyncadd [#allocation3], 4294967168 }
  0x46   :  { %769 = dma.done.wait [#allocation6], 2048  }
  0x47   :  { %770 = vsyncadd [#allocation6], 4294965248 }
  0x48   :  { %771 = dma.done.wait [#allocation9], 1024  }
  0x49   :  { %772 = vsyncadd [#allocation9], 4294966272  ;;  %v781_v0 = vmov 0.0   ;;  %vm782_vm0 = vmmov 0   ;;  %v629_v1 = vld [vmem:[#allocation5] sm:$0xff]   ;;  %v630_v2 = vld [vmem:[#allocation5 + $0x8] sm:$0xff]   ;;  %v219_v42 = vlaneseq }
  0x4a   :  { %560 = vmatprep.subr.bf16.mxu0 %v781_v0  ;;  %576 = vmatprep.mubr.msk.bf16.mxu0 %vm782_vm0, %v781_v0  ;;  %v631_v3 = vld [vmem:[#allocation5 + $0x10] sm:$0xff]   ;;  %v632_v4 = vld [vmem:[#allocation5 + $0x18] sm:$0xff]   ;;  %v633_v5 = vld [vmem:[#allocation5 + $0x20] sm:$0xff]  }
  0x4b   :  { %580 = vmatprep.subr.bf16.mxu1 %v781_v0  ;;  %596 = vmatprep.mubr.msk.bf16.mxu1 %vm782_vm0, %v781_v0  ;;  %v634_v6 = vld [vmem:[#allocation5 + $0x28] sm:$0xff]   ;;  %v635_v7 = vld [vmem:[#allocation5 + $0x30] sm:$0xff]   ;;  %v636_v8 = vld [vmem:[#allocation5 + $0x38] sm:$0xff]   ;;  %v220_v43 = vshrl.u32 %v219_v42, 7 }
  0x4c   :  { %561 = vmatpush3.bf16.msra.mxu0 %v629_v1  ;;  %v87_v9 = vld [vmem:[#allocation2] sm:$0xff]  ;;  %v637_v11 = vld [vmem:[#allocation7] sm:$0xff]   ;;  %v638_v12 = vld [vmem:[#allocation7 + $0x8] sm:$0xff]  }
  0x4d   :  { %562 = vmatprep.subr.bf16.mxu0 %v781_v0  ;;  %v106_v10 = vpack.c.bf16 %v87_v9, %v87_v9  ;;  %581 = vmatpush3.bf16.msra.mxu1 %v637_v11  ;;  %v639_v13 = vld [vmem:[#allocation7 + $0x10] sm:$0xff]   ;;  %v640_v14 = vld [vmem:[#allocation7 + $0x18] sm:$0xff]   ;;  %v641_v15 = vld [vmem:[#allocation7 + $0x20] sm:$0xff]   ;;  %v917_v45 = vsub.s32 0, %v220_v43 }
  0x4e   :  { %582 = vmatprep.subr.bf16.mxu1 %v781_v0  ;;  %v642_v16 = vld [vmem:[#allocation7 + $0x28] sm:$0xff]   ;;  %v643_v17 = vld [vmem:[#allocation7 + $0x30] sm:$0xff]   ;;  %v644_v18 = vld [vmem:[#allocation7 + $0x38] sm:$0xff]  }
  0x4f   :  { %v104_v44 = vld [vmem:[%s956_s2] sm:$0x1]  ;;  %v645_v57 = vld [vmem:[#allocation8] sm:$0xff]   ;;  %v646_v58 = vld [vmem:[#allocation8 + $0x8] sm:$0xff]  }
  0x50   :  { %563 = vmatpush3.bf16.msra.mxu0 %v630_v2  ;;  %v105_v48 = vld [vmem:[%s957_s3] sm:$0x1]  ;;  %v647_v59 = vld [vmem:[#allocation8 + $0x10] sm:$0xff]   ;;  %v649_v61 = vld [vmem:[#allocation8 + $0x20] sm:$0xff]  }
  0x51   :  { %564 = vmatprep.subr.bf16.mxu0 %v781_v0  ;;  %583 = vmatpush3.bf16.msra.mxu1 %v638_v12  ;;  %v648_v60 = vld [vmem:[#allocation8 + $0x18] sm:$0xff]   ;;  %v650_v62 = vld [vmem:[#allocation8 + $0x28] sm:$0xff]   ;;  %v651_v63 = vld [vmem:[#allocation8 + $0x30] sm:$0xff]  }
  0x52   :  { %584 = vmatprep.subr.bf16.mxu1 %v781_v0  ;;  %v652_v1 = vld [vmem:[#allocation8 + $0x38] sm:$0xff]  }
  0x54   :  { %565 = vmatpush3.bf16.msra.mxu0 %v631_v3 }
  0x55   :  { %566 = vmatprep.subr.bf16.mxu0 %v781_v0  ;;  %585 = vmatpush3.bf16.msra.mxu1 %v639_v13 }
  0x56   :  { %586 = vmatprep.subr.bf16.mxu1 %v781_v0 }
  0x58   :  { %567 = vmatpush3.bf16.msra.mxu0 %v632_v4 }
  0x59   :  { %568 = vmatprep.subr.bf16.mxu0 %v781_v0  ;;  %587 = vmatpush3.bf16.msra.mxu1 %v640_v14 }
  0x5a   :  { %588 = vmatprep.subr.bf16.mxu1 %v781_v0 }
  0x5c   :  { %569 = vmatpush3.bf16.msra.mxu0 %v633_v5 }
  0x5d   :  { %570 = vmatprep.subr.bf16.mxu0 %v781_v0  ;;  %589 = vmatpush3.bf16.msra.mxu1 %v641_v15 }
  0x5e   :  { %590 = vmatprep.subr.bf16.mxu1 %v781_v0 }
  0x60   :  { %571 = vmatpush3.bf16.msra.mxu0 %v634_v6 }
  0x61   :  { %572 = vmatprep.subr.bf16.mxu0 %v781_v0  ;;  %591 = vmatpush3.bf16.msra.mxu1 %v642_v16 }
  0x62   :  { %592 = vmatprep.subr.bf16.mxu1 %v781_v0 }
  0x64   :  { %573 = vmatpush3.bf16.msra.mxu0 %v635_v7 }
  0x65   :  { %574 = vmatprep.subr.bf16.mxu0 %v781_v0  ;;  %593 = vmatpush3.bf16.msra.mxu1 %v643_v17 }
  0x66   :  { %594 = vmatprep.subr.bf16.mxu1 %v781_v0 }
  0x68   :  { %575 = vmatpush3.bf16.msra.mxu0 %v636_v8 }
  0x69   :  { %600 = vmatprep.subr.bf16.mxu0 %v781_v0  ;;  %595 = vmatpush3.bf16.msra.mxu1 %v644_v18 }
  0x6b   :  { %577 = vmatmul.mubr.bf16.vlgmr.msra.gmra.mrb[0].mxu0 %v106_v10 }
  0x6c   :  { %616 = vmatprep.mubr.msk.bf16.mxu0 %vm782_vm0, %v781_v0  ;;  %601 = vmatpush3.bf16.msra.mxu0 %v645_v57 }
  0x6d   :  { %602 = vmatprep.subr.bf16.mxu0 %v781_v0 }
  0x70   :  { %603 = vmatpush3.bf16.msra.mxu0 %v646_v58 }
  0x71   :  { %604 = vmatprep.subr.bf16.mxu0 %v781_v0 }
  0x74   :  { %605 = vmatpush3.bf16.msra.mxu0 %v647_v59 }
  0x75   :  { %606 = vmatprep.subr.bf16.mxu0 %v781_v0 }
  0x78   :  { %607 = vmatpush3.bf16.msra.mxu0 %v648_v60 }
  0x79   :  { %608 = vmatprep.subr.bf16.mxu0 %v781_v0 }
  0x7c   :  { %609 = vmatpush3.bf16.msra.mxu0 %v649_v61 }
  0x7d   :  { %610 = vmatprep.subr.bf16.mxu0 %v781_v0 }
  0x80   :  { %611 = vmatpush3.bf16.msra.mxu0 %v650_v62 }
  0x81   :  { %612 = vmatprep.subr.bf16.mxu0 %v781_v0 }
  0x84   :  { %613 = vmatpush3.bf16.msra.mxu0 %v651_v63 }
  0x85   :  { %614 = vmatprep.subr.bf16.mxu0 %v781_v0 }
  0x88   :  { %615 = vmatpush3.bf16.msra.mxu0 %v652_v1 }
 0x13e   :  { %v189_v19 = vpop.f32.mrb[0].mxu0 }
 0x13f   :  { %v195_v20 = vrot.slane %v189_v19, 4  ;;  %v201_v21 = vmul.f32 %v189_v19, %v189_v19  ;;  %v578_v22 = vpop.f32.mrb[1].mxu0 }
 0x140   :  { %v192_v23 = vpop.f32.mrb[2].mxu0 }
 0x141   :  { %v196_v24 = vadd.f32 %v195_v20, %v189_v19  ;;  %v202_v25 = vrot.slane %v201_v21, 4  ;;  %v579_v26 = vpop.f32.mrb[3].mxu0 }
 0x143   :  { %v197_v27 = vrot.slane %v196_v24, 2  ;;  %v203_v28 = vadd.f32 %v202_v25, %v201_v21 }
 0x145   :  { %v198_v29 = vadd.f32 %v197_v27, %v196_v24  ;;  %v204_v30 = vrot.slane %v203_v28, 2  ;;  %v249_v24 = vld [vmem:[%s959_s5] sm:$0x1]  ;;  %s783_s5 = smov [#allocation10]  }
 0x146   :  { %v250_v27 = vld [vmem:[%s960_s6] sm:$0x1]  ;;  %s497_s22 = sshll.u32 %s783_s5, 4  ;;  %s498_s22 = int_to_ptr.vmem [resolvable:$true] %s497_s22 }
 0x147   :  { %v199_v31 = vrot.slane %v198_v29, 1  ;;  %v205_v32 = vadd.f32 %v204_v30, %v203_v28  ;;  %s745_s6 = scalar_lea.vmem %s498_s22, 128  ;;  %p750_p5 = scmp.lt.s32.totalorder %s498_s22, %s498_s22 }
 0x148   :  { %p746_p4 = scmp.ne.s32.totalorder %s498_s22, %s745_s6  ;;  %p751_p6 = scmp.lt.s32.totalorder %s745_s6, %s745_s6 }
 0x149   :  { %v200_v33 = vadd.f32 %v199_v31, %v198_v29  ;;  %v206_v34 = vrot.slane %v205_v32, 1 }
 0x14a   :  { %p752_p7 = por %p751_p6, %p750_p5 }
 0x14b   :  { %v207_v35 = vadd.f32 %v206_v34, %v205_v32  ;;  %v208_v36 = vmul.f32 0.125, %v200_v33 }
 0x14c   :  { %p753_p8 = pnand %p752_p7, %p746_p4 }
 0x14d   :  { %v209_v37 = vmul.f32 0.125, %v207_v35  ;;  %v210_v38 = vmul.f32 %v208_v36, %v208_v36 }
 0x14f   :  { %v211_v39 = vsub.f32 %v209_v37, %v210_v38 }
 0x151   :  { %v212_v40 = vmax.f32 %v211_v39, 0.0 }
 0x153   :  { %v213_v41 = vadd.f32 1e-05, %v212_v40 }
 0x155   :  { %653 = vrsqrt.f32 %v213_v41 }
 0x15f   :  { %v654_v46 = vpop.eup %653 }
 0x160   :  { %v215_v47 = vmul.f32 %v654_v46, %v104_v44 }
 0x162   :  { %v222_v49 = vrot.slane %v215_v47, %v917_v45  ;;  %v216_v50 = vmul.f32 %v215_v47, %v208_v36  ;;  %v524_v36 = vld [vmem:[%s962_s8] ss:$0 sm:$0xff] }
 0x164   :  { %v217_v51 = vsub.f32 %v105_v48, %v216_v50  ;;  %v224_v52 = vmul.f32 %v222_v49, %v189_v19 }
 0x166   :  { %v229_v53 = vrot.slane %v217_v51, %v917_v45 }
 0x168   :  { %v231_v54 = vadd.f32 %v229_v53, %v224_v52 }
 0x16a   :  { %v232_v55 = vmax.f32 %v231_v54, 0.0 }
 0x16c   :  { %v251_v56 = vpack.c.bf16 %v232_v55, %v232_v55 }
 0x16e   :  { %597 = vmatmul.mubr.bf16.vlgmr.msra.gmra.mrb[0].mxu1 %v251_v56 }
 0x241   :  { %v334_v2 = vpop.f32.mrb[0].mxu1 }
 0x242   :  { %v340_v3 = vrot.slane %v334_v2, 4  ;;  %v346_v4 = vmul.f32 %v334_v2, %v334_v2  ;;  %v598_v5 = vpop.f32.mrb[1].mxu1 }
 0x243   :  { %v337_v6 = vpop.f32.mrb[2].mxu1 }
 0x244   :  { %v341_v7 = vadd.f32 %v340_v3, %v334_v2  ;;  %v347_v8 = vrot.slane %v346_v4, 4  ;;  %v599_v9 = vpop.f32.mrb[3].mxu1 }
 0x246   :  { %v342_v10 = vrot.slane %v341_v7, 2  ;;  %v348_v11 = vadd.f32 %v347_v8, %v346_v4 }
 0x248   :  { %v343_v12 = vadd.f32 %v342_v10, %v341_v7  ;;  %v349_v13 = vrot.slane %v348_v11, 2 }
 0x24a   :  { %v344_v14 = vrot.slane %v343_v12, 1  ;;  %v350_v15 = vadd.f32 %v349_v13, %v348_v11 }
 0x24c   :  { %v345_v16 = vadd.f32 %v344_v14, %v343_v12  ;;  %v351_v17 = vrot.slane %v350_v15, 1 }
 0x24e   :  { %v352_v18 = vadd.f32 %v351_v17, %v350_v15  ;;  %v353_v0 = vmul.f32 0.125, %v345_v16 }
 0x250   :  { %v354_v19 = vmul.f32 0.125, %v352_v18  ;;  %v355_v20 = vmul.f32 %v353_v0, %v353_v0 }
 0x252   :  { %v356_v21 = vsub.f32 %v354_v19, %v355_v20 }
 0x254   :  { %v357_v22 = vmax.f32 %v356_v21, 0.0 }
 0x256   :  { %v358_v23 = vadd.f32 1e-05, %v357_v22 }
 0x258   :  { %655 = vrsqrt.f32 %v358_v23 }
 0x262   :  { %v656_v25 = vpop.eup %655 }
 0x263   :  { %v360_v26 = vmul.f32 %v656_v25, %v249_v24 }
 0x265   :  { %v361_v28 = vmul.f32 %v360_v26, %v353_v0  ;;  %v367_v29 = vrot.slane %v360_v26, %v917_v45 }
 0x267   :  { %v362_v30 = vsub.f32 %v250_v27, %v361_v28  ;;  %v369_v31 = vmul.f32 %v367_v29, %v334_v2 }
 0x269   :  { %v374_v32 = vrot.slane %v362_v30, %v917_v45 }
 0x26b   :  { %v376_v33 = vadd.f32 %v374_v32, %v369_v31 }
 0x26d   :  { %v377_v34 = vmax.f32 %v376_v33, 0.0 }
 0x26f   :  { %v378_v35 = vpack.c.bf16 %v377_v34, %v377_v34 }
 0x271   :  { %617 = vmatmul.mubr.bf16.vlgmr.msra.gmra.mrb[4].mxu0 %v378_v35 }
 0x344   :  { %v484_v37 = vpop.f32.mrb[4].mxu0 }
 0x345   :  { %v485_v38 = vadd.f32 %v524_v36, %v484_v37  ;;  %v618_v39 = vpop.f32.mrb[5].mxu0 }
 0x346   :  { %v487_v40 = vpop.f32.mrb[6].mxu0 }
 0x347   :  { %490 = vst [vmem:[#allocation10] sm:$0xff] %v485_v38  ;;  %v619_v41 = vpop.f32.mrb[7].mxu0 }
 0x348   :  { %756 = shalt.err (!%p753_p8)
}
 0x349   :  { %s757_s8 = scalar_lea.hbm %s963_s9, 128 }
 0x34a   :  { %p758_p9 = scmp.ne.s32.totalorder %s963_s9, %s757_s8  ;;  %p761_p10 = scmp.lt.u32.totalorder %s757_s8, %s963_s9 }
 0x34c   :  { %p763_p11 = pnand %p761_p10, %p758_p9 }
 0x34e   :  { %766 = shalt.err (!%p763_p11)
}
 0x34f   :  { %500 = dma.vmem_to_hbm [thread:$0]  %s498_s22, 128, %s963_s9, [#allocation4]  }
 0x350   :  { %773 = dma.done.wait [#allocation4], 128  }
 0x351   :  { %774 = vsyncadd [#allocation4], 4294967168 }
 0x352   :  { %504 = vsyncpa [#allocation3], 1 }
 0x353   :  { %505 = vsyncpa [#allocation6], 1 }
 0x354   :  { %506 = vsyncpa [#allocation9], 1 }
 0x355   :  { %507 = vsyncpa [#allocation4], 1 }

</bundles_post_ra>
